<compile_context>
chip_gen: v7x
topology: tpu7x:2x2x1
jax: 0.10.0
libtpu: 0.0.40
codegen_flags: <defaults>
</compile_context>

<pallas_src>
import math
import numpy as np
import jax
import jax.numpy as jnp
from jax.experimental import pallas as pl
from jax.experimental.pallas import tpu as pltpu

SIGMA_DATA = 0.5


def _round_up(x, m):
    return ((x + m - 1) // m) * m


def _pick_spatial_tile(hw, w, cap=8192, batch=1, min_steps=4):
    """Pick (TP, HWp, BH): lane tile, padded spatial extent, halo block width.

    TP is a multiple of lcm(W, BH) (so it is whole rows, a multiple of 128, and
    halo block offsets stay block-aligned) and divides HWp.  Preference: the
    largest tile <= cap that still yields >= min_steps grid steps (v7x has 2
    TensorCores; no effect on v5e/v6e beyond negligible per-step overhead).
    """
    bh = _round_up(2 * w + 2, 128)            # bottom-halo block, 128-multiple
    step = (w * bh) // math.gcd(w, bh)        # TP must be a multiple of this
    hwp = _round_up(hw, step)
    divisors = [t for t in range(step, hwp + 1, step) if hwp % t == 0]
    cands = [t for t in divisors if t <= cap] or [divisors[0]]
    tp = max(cands)
    for t in sorted(cands, reverse=True):
        if batch * (hwp // t) >= min_steps:
            tp = t
            break
    return tp, hwp, bh


def _make_kernel(c_hr, c_tot, w, tp, bh):
    """Kernel for one (batch, row-group) grid step."""

    def kernel(cskip_ref, cscale_ref, w_ref, bias_ref, xmain_ref, xhalo_ref,
               out_ref):
        # cskip_ref  : SMEM (B,) f32            per-batch skip coefficient
        # cscale_ref : SMEM (B,) f32            per-batch c_in * c_out
        # w_ref      : VMEM (C_out, 9*C_tot)    shared conv weights (resident)
        # bias_ref   : VMEM (1, C_out, 1)       per-batch FiLM'd bias * c_out
        # xmain_ref  : VMEM (1, C_tot, TP)      row block of padded-flat input
        # xhalo_ref  : VMEM (1, C_tot, BH)      bottom halo (next rows / pad)
        # out_ref    : VMEM (1, C_out, TP)      D_x tile
        b = pl.program_id(0)
        main = xmain_ref[0]                                   # (C_tot, TP)
        halo = xhalo_ref[0]                                   # (C_tot, BH)
        window = jnp.concatenate([main, halo], axis=-1)       # (C_tot, TP+BH)

        # Column-edge masks: dx = +-1 taps must not leak across row boundaries
        # (SAME padding).  TP is a multiple of W, so the mask is tile-static.
        col = jax.lax.broadcasted_iota(jnp.int32, (1, tp), 1) % w
        not_left = col != 0
        not_right = col != (w - 1)

        # Build the nine 3x3 taps in-kernel as contiguous lane slices of the
        # halo'd window -- no im2col tensor in HBM, no strided HBM reads.
        taps = []
        for ky in range(3):
            for kx in range(3):
                t = window[:, ky * w + kx: ky * w + kx + tp]
                if kx == 0:
                    t = jnp.where(not_left, t, 0.0)
                elif kx == 2:
                    t = jnp.where(not_right, t, 0.0)
                taps.append(t)
        patches = jnp.concatenate(taps, axis=0)               # (9*C_tot, TP)

        # One MXU dot against the shared weights; per-batch EDM scale and the
        # FiLM'd bias are applied to the f32 accumulator (not baked into W).
        f_x = jnp.dot(w_ref[...], patches,
                      preferred_element_type=jnp.float32)     # (C_out, TP)

        # Skip term reuses the (already loaded, exact f32) center tap of the
        # x channels -- no separate x input.
        x_c = window[:c_hr, w + 1: w + 1 + tp]
        out_ref[0] = cskip_ref[b] * x_c + cscale_ref[b] * f_x + bias_ref[0]

    return kernel


def edm_precond_sr_forward(x, img_lr, sigma, w, bias, noise_w,
                           sigma_data=SIGMA_DATA, spatial_tile_cap=8192):
    """x: (B, C_hr, H, W), img_lr: (B, C_lr, H, W), sigma: (B,) or (B,1,1,1)."""
    x = x.astype(jnp.float32)
    img_lr = img_lr.astype(jnp.float32)
    sigma = sigma.astype(jnp.float32).reshape(-1)

    B, C_hr, H, W = x.shape
    C_lr = img_lr.shape[1]
    C_tot = C_hr + C_lr
    C_out = C_hr
    HW = H * W
    K = 9 * C_tot

    # EDM preconditioning coefficients (tiny per-batch scalar glue).
    c_skip = sigma_data ** 2 / (sigma ** 2 + sigma_data ** 2)
    c_out_c = sigma * sigma_data / jnp.sqrt(sigma ** 2 + sigma_data ** 2)
    c_in = 1.0 / jnp.sqrt(sigma_data ** 2 + sigma ** 2)
    c_noise = jnp.log(sigma) / 4.0
    c_scale = c_in * c_out_c                  # applied to the f32 accumulator

    # Shared, batch-invariant conv weights: (C_out, 9*C_tot), resident in VMEM.
    w_mat = jnp.transpose(w.astype(jnp.float32).reshape(9, C_tot, C_out),
                          (2, 0, 1)).reshape(C_out, K)
    # Per-batch c_noise-FiLM'd bias, pre-scaled by c_out -> (B, C_out, 1).
    bias_eff = (c_out_c[:, None] *
                (bias[None, :].astype(jnp.float32)
                 + c_noise[:, None] * noise_w[None, :]))[:, :, None]

    TP, HWp, BH = _pick_spatial_tile(HW, W, cap=spatial_tile_cap, batch=B)
    N = HWp + BH
    S = HWp // TP

    # Row-padded, lane-flattened input: [W+1 zeros | xcat | zeros].  The W+1
    # leading zeros implement the top "SAME" padding row (plus one element so
    # every tap is a non-negative lane offset); the trailing zeros provide the
    # bottom padding row, the last tile's halo block, and the HW -> HWp pad.
    xcat = jnp.concatenate([x, img_lr], axis=1).reshape(B, C_tot, HW)
    xin = jnp.pad(xcat, ((0, 0), (0, 0), (W + 1, N - (W + 1) - HW)))

    out_flat = pl.pallas_call(
        _make_kernel(C_hr, C_tot, W, TP, BH),
        out_shape=jax.ShapeDtypeStruct((B, C_out, HWp), jnp.float32),
        grid=(B, S),
        in_specs=[
            pl.BlockSpec(memory_space=pltpu.MemorySpace.SMEM),     # c_skip (B,)
            pl.BlockSpec(memory_space=pltpu.MemorySpace.SMEM),     # c_in*c_out (B,)
            pl.BlockSpec((C_out, K), lambda b, s: (0, 0)),         # shared weights
            pl.BlockSpec((1, C_out, 1), lambda b, s: (b, 0, 0)),   # per-batch bias
            pl.BlockSpec((1, C_tot, TP), lambda b, s: (b, 0, s)),  # main row block
            pl.BlockSpec((1, C_tot, BH),                           # bottom halo
                         lambda b, s: (b, 0, (s + 1) * (TP // BH))),
        ],
        out_specs=pl.BlockSpec((1, C_out, TP), lambda b, s: (b, 0, s)),
        compiler_params=pltpu.CompilerParams(
            dimension_semantics=("parallel", "parallel"),
            vmem_limit_bytes=32 * 1024 * 1024),
    )(c_skip, c_scale, w_mat, bias_eff, xin, xin)

    return out_flat[:, :, :HW].reshape(B, C_out, H, W)             # NCHW


def reference_forward(x, img_lr, sigma, w, bias, noise_w, sigma_data=SIGMA_DATA):
    """Pure-JAX reference of the same computation (NCHW, lax.conv)."""
    x = x.astype(jnp.float32)
    sigma = sigma.astype(jnp.float32).reshape(-1, 1, 1, 1)
    c_skip = sigma_data ** 2 / (sigma ** 2 + sigma_data ** 2)
    c_out = sigma * sigma_data / jnp.sqrt(sigma ** 2 + sigma_data ** 2)
    c_in = 1.0 / jnp.sqrt(sigma_data ** 2 + sigma ** 2)
    c_noise = jnp.log(sigma) / 4.0
    arg = c_in * jnp.concatenate([x, img_lr.astype(jnp.float32)], axis=1)
    w_oihw = jnp.transpose(w, (3, 2, 0, 1))                       # (Cout, Cin, 3, 3)
    f_x = jax.lax.conv_general_dilated(
        arg, w_oihw, window_strides=(1, 1), padding="SAME",
        dimension_numbers=("NCHW", "OIHW", "NCHW"),
        precision=jax.lax.Precision.HIGHEST)
    per_b_bias = bias[None, :] + c_noise.reshape(-1, 1) * noise_w[None, :]
    f_x = f_x + per_b_bias[:, :, None, None]
    return c_skip * x + c_out * f_x


if __name__ == "__main__":
    B, C_hr, C_lr, H, W = 2, 4, 4, 16, 16   # img_out_channels=4, img_in_channels=4
    C_tot = C_hr + C_lr

    key = jax.random.PRNGKey(0)
    k1, k2, k3, k4, k5, k6 = jax.random.split(key, 6)
    x = jax.random.normal(k1, (B, C_hr, H, W), jnp.float32)       # noisy HR image
    img_lr = jax.random.normal(k2, (B, C_lr, H, W), jnp.float32)  # LR conditioning
    sigma = jnp.exp(jax.random.normal(k3, (B,), jnp.float32) * 0.5)

    # Deterministic surrogate-model parameters (3x3 conv + bias + noise FiLM).
    w = jax.random.normal(k4, (3, 3, C_tot, C_hr), jnp.float32) * 0.1
    bias = jax.random.normal(k5, (C_hr,), jnp.float32) * 0.1
    noise_w = jax.random.normal(k6, (C_hr,), jnp.float32) * 0.1

    fwd = jax.jit(edm_precond_sr_forward)
    d_x = fwd(x, img_lr, sigma, w, bias, noise_w)
    d_x = jax.block_until_ready(d_x)

    ref = reference_forward(x, img_lr, sigma, w, bias, noise_w)
    assert d_x.shape == (B, C_hr, H, W) and d_x.dtype == jnp.float32
    np.testing.assert_allclose(np.asarray(d_x), np.asarray(ref),
                               atol=2e-2, rtol=2e-2)
    print("KERNEL_OK")
</pallas_src>

<mosaic_0001>
module attributes {stable_mosaic.version = 11 : i64} {
  func.func @kernel(%arg0: i32, %arg1: i32, %arg2: memref<2xf32, #tpu.memory_space<smem>>, %arg3: memref<2xf32, #tpu.memory_space<smem>>, %arg4: memref<4x72xf32, #tpu.memory_space<vmem>>, %arg5: memref<1x4x1xf32, #tpu.memory_space<vmem>>, %arg6: memref<1x8x128xf32, #tpu.memory_space<vmem>>, %arg7: memref<1x8x128xf32, #tpu.memory_space<vmem>>, %arg8: memref<1x4x128xf32, #tpu.memory_space<vmem>>) attributes {dimension_semantics = [#tpu.dimension_semantics<parallel>, #tpu.dimension_semantics<parallel>], iteration_bounds = array<i64: 2, 2>, scalar_prefetch = 0 : i64, scratch_operands = 0 : i64, tpu.core_type = #tpu.core_type<tc>, window_params = [{transform_indices = @transform_0, window_bounds = array<i64: 2>}, {transform_indices = @transform_1, window_bounds = array<i64: 2>}, {pipeline_mode = #tpu.pipeline_mode<synchronous>, transform_indices = @transform_2, window_bounds = array<i64: 4, 72>}, {transform_indices = @transform_3, window_bounds = array<i64: 1, 4, 1>}, {transform_indices = @transform_4, window_bounds = array<i64: 1, 8, 128>}, {transform_indices = @transform_5, window_bounds = array<i64: 1, 8, 128>}, {transform_indices = @transform_6, window_bounds = array<i64: 1, 4, 128>}]} {
    %c0 = arith.constant 0 : index
    %c0_0 = arith.constant 0 : index
    %c0_1 = arith.constant 0 : index
    %0 = vector.load %arg6[%c0, %c0_0, %c0_1] : memref<1x8x128xf32, #tpu.memory_space<vmem>>, vector<1x8x128xf32>
    %1 = vector.shape_cast %0 : vector<1x8x128xf32> to vector<8x128xf32>
    %c0_2 = arith.constant 0 : index
    %c0_3 = arith.constant 0 : index
    %c0_4 = arith.constant 0 : index
    %2 = vector.load %arg7[%c0_2, %c0_3, %c0_4] : memref<1x8x128xf32, #tpu.memory_space<vmem>>, vector<1x8x128xf32>
    %3 = vector.shape_cast %2 : vector<1x8x128xf32> to vector<8x128xf32>
    %4 = tpu.concatenate %1, %3 in 1 : vector<8x128xf32>, vector<8x128xf32> -> vector<8x256xf32>
    %5 = tpu.iota {dimensions = array<i32: 1>} : vector<1x128xi32>
    %c16_i32 = arith.constant 16 : i32
    %c0_i32 = arith.constant 0 : i32
    %6 = arith.cmpi eq, %c16_i32, %c0_i32 : i32
    %c1_i32 = arith.constant 1 : i32
    %7 = arith.select %6, %c1_i32, %c16_i32 : i32
    %8 = vector.broadcast %7 : i32 to vector<1x128xi32>
    %9 = arith.remsi %5, %8 : vector<1x128xi32>
    %c0_i32_5 = arith.constant 0 : i32
    %10 = vector.broadcast %c0_i32_5 : i32 to vector<1x128xi32>
    %11 = arith.cmpi ne, %9, %10 : vector<1x128xi32>
    %c0_i32_6 = arith.constant 0 : i32
    %12 = vector.broadcast %c0_i32_6 : i32 to vector<1x128xi32>
    %13 = arith.cmpi slt, %9, %12 : vector<1x128xi32>
    %c0_i32_7 = arith.constant 0 : i32
    %14 = arith.cmpi slt, %7, %c0_i32_7 : i32
    %15 = vector.broadcast %14 : i1 to vector<1x128xi1>
    %16 = vector.broadcast %15 : vector<1x128xi1> to vector<1x128xi1>
    %17 = arith.xori %13, %16 : vector<1x128xi1>
    %18 = arith.andi %17, %11 : vector<1x128xi1>
    %19 = vector.broadcast %7 : i32 to vector<1x128xi32>
    %20 = arith.addi %9, %19 : vector<1x128xi32>
    %21 = arith.select %18, %20, %9 : vector<1x128xi1>, vector<1x128xi32>
    %c0_i32_8 = arith.constant 0 : i32
    %22 = vector.broadcast %c0_i32_8 : i32 to vector<1x128xi32>
    %23 = arith.cmpi ne, %21, %22 : vector<1x128xi32>
    %c15_i32 = arith.constant 15 : i32
    %24 = vector.broadcast %c15_i32 : i32 to vector<1x128xi32>
    %25 = arith.cmpi ne, %21, %24 : vector<1x128xi32>
    %26 = vector.extract_strided_slice %4 {offsets = [0, 0], sizes = [8, 128], strides = [1, 1]} : vector<8x256xf32> to vector<8x128xf32>
    %cst = arith.constant 0.000000e+00 : f32
    %27 = vector.shape_cast %23 : vector<1x128xi1> to vector<1x128xi1>
    %28 = vector.broadcast %27 : vector<1x128xi1> to vector<8x128xi1>
    %29 = vector.broadcast %cst : f32 to vector<8x128xf32>
    %30 = arith.select %28, %26, %29 : vector<8x128xi1>, vector<8x128xf32>
    %31 = vector.extract_strided_slice %4 {offsets = [0, 1], sizes = [8, 128], strides = [1, 1]} : vector<8x256xf32> to vector<8x128xf32>
    %32 = vector.extract_strided_slice %4 {offsets = [0, 2], sizes = [8, 128], strides = [1, 1]} : vector<8x256xf32> to vector<8x128xf32>
    %cst_9 = arith.constant 0.000000e+00 : f32
    %33 = vector.shape_cast %25 : vector<1x128xi1> to vector<1x128xi1>
    %34 = vector.broadcast %33 : vector<1x128xi1> to vector<8x128xi1>
    %35 = vector.broadcast %cst_9 : f32 to vector<8x128xf32>
    %36 = arith.select %34, %32, %35 : vector<8x128xi1>, vector<8x128xf32>
    %37 = vector.extract_strided_slice %4 {offsets = [0, 16], sizes = [8, 128], strides = [1, 1]} : vector<8x256xf32> to vector<8x128xf32>
    %cst_10 = arith.constant 0.000000e+00 : f32
    %38 = vector.shape_cast %23 : vector<1x128xi1> to vector<1x128xi1>
    %39 = vector.broadcast %38 : vector<1x128xi1> to vector<8x128xi1>
    %40 = vector.broadcast %cst_10 : f32 to vector<8x128xf32>
    %41 = arith.select %39, %37, %40 : vector<8x128xi1>, vector<8x128xf32>
    %42 = vector.extract_strided_slice %4 {offsets = [0, 17], sizes = [8, 128], strides = [1, 1]} : vector<8x256xf32> to vector<8x128xf32>
    %43 = vector.extract_strided_slice %4 {offsets = [0, 18], sizes = [8, 128], strides = [1, 1]} : vector<8x256xf32> to vector<8x128xf32>
    %cst_11 = arith.constant 0.000000e+00 : f32
    %44 = vector.shape_cast %25 : vector<1x128xi1> to vector<1x128xi1>
    %45 = vector.broadcast %44 : vector<1x128xi1> to vector<8x128xi1>
    %46 = vector.broadcast %cst_11 : f32 to vector<8x128xf32>
    %47 = arith.select %45, %43, %46 : vector<8x128xi1>, vector<8x128xf32>
    %48 = vector.extract_strided_slice %4 {offsets = [0, 32], sizes = [8, 128], strides = [1, 1]} : vector<8x256xf32> to vector<8x128xf32>
    %cst_12 = arith.constant 0.000000e+00 : f32
    %49 = vector.shape_cast %23 : vector<1x128xi1> to vector<1x128xi1>
    %50 = vector.broadcast %49 : vector<1x128xi1> to vector<8x128xi1>
    %51 = vector.broadcast %cst_12 : f32 to vector<8x128xf32>
    %52 = arith.select %50, %48, %51 : vector<8x128xi1>, vector<8x128xf32>
    %53 = vector.extract_strided_slice %4 {offsets = [0, 33], sizes = [8, 128], strides = [1, 1]} : vector<8x256xf32> to vector<8x128xf32>
    %54 = vector.extract_strided_slice %4 {offsets = [0, 34], sizes = [8, 128], strides = [1, 1]} : vector<8x256xf32> to vector<8x128xf32>
    %cst_13 = arith.constant 0.000000e+00 : f32
    %55 = vector.shape_cast %25 : vector<1x128xi1> to vector<1x128xi1>
    %56 = vector.broadcast %55 : vector<1x128xi1> to vector<8x128xi1>
    %57 = vector.broadcast %cst_13 : f32 to vector<8x128xf32>
    %58 = arith.select %56, %54, %57 : vector<8x128xi1>, vector<8x128xf32>
    %59 = tpu.concatenate %30, %31, %36, %41, %42, %47, %52, %53, %58 in 0 : vector<8x128xf32>, vector<8x128xf32>, vector<8x128xf32>, vector<8x128xf32>, vector<8x128xf32>, vector<8x128xf32>, vector<8x128xf32>, vector<8x128xf32>, vector<8x128xf32> -> vector<72x128xf32>
    %c0_14 = arith.constant 0 : index
    %c0_15 = arith.constant 0 : index
    %60 = vector.load %arg4[%c0_14, %c0_15] : memref<4x72xf32, #tpu.memory_space<vmem>>, vector<4x72xf32>
    %cst_16 = arith.constant dense<0.000000e+00> : vector<4x128xf32>
    %61 = tpu.matmul %60, %59, %cst_16 {dimension_numbers = #tpu.dot_dimension_numbers<[1], [0], [0], [1], [0, 0, 1, 1], [], []>} : vector<4x72xf32>, vector<72x128xf32>, vector<4x128xf32> -> vector<4x128xf32>
    %62 = vector.extract_strided_slice %4 {offsets = [0, 17], sizes = [4, 128], strides = [1, 1]} : vector<8x256xf32> to vector<4x128xf32>
    %63 = arith.index_cast %arg0 : i32 to index
    %64 = memref.load %arg2[%63] : memref<2xf32, #tpu.memory_space<smem>>
    %65 = vector.broadcast %64 : f32 to vector<4x128xf32>
    %66 = arith.mulf %65, %62 : vector<4x128xf32>
    %67 = arith.index_cast %arg0 : i32 to index
    %68 = memref.load %arg3[%67] : memref<2xf32, #tpu.memory_space<smem>>
    %69 = vector.broadcast %68 : f32 to vector<4x128xf32>
    %70 = arith.mulf %69, %61 : vector<4x128xf32>
    %71 = arith.addf %66, %70 : vector<4x128xf32>
    %c0_17 = arith.constant 0 : index
    %c0_18 = arith.constant 0 : index
    %c0_19 = arith.constant 0 : index
    %72 = vector.load %arg5[%c0_17, %c0_18, %c0_19] : memref<1x4x1xf32, #tpu.memory_space<vmem>>, vector<1x4x1xf32>
    %73 = vector.shape_cast %72 : vector<1x4x1xf32> to vector<4x1xf32>
    %74 = vector.broadcast %73 : vector<4x1xf32> to vector<4x128xf32>
    %75 = arith.addf %71, %74 : vector<4x128xf32>
    %c0_20 = arith.constant 0 : index
    %c0_21 = arith.constant 0 : index
    %c0_22 = arith.constant 0 : index
    %76 = vector.load %arg8[%c0_20, %c0_21, %c0_22] : memref<1x4x128xf32, #tpu.memory_space<vmem>>, vector<1x4x128xf32>
    %77 = vector.shape_cast %76 : vector<1x4x128xf32> to vector<4x128xf32>
    %78 = vector.shape_cast %75 : vector<4x128xf32> to vector<1x4x128xf32>
    tpu.vector_store %arg8[%c0_20, %c0_21, %c0_22], %78 {strides = array<i32>} : memref<1x4x128xf32, #tpu.memory_space<vmem>>, vector<1x4x128xf32>,
    return
  }
  func.func @transform_0(%arg0: i32, %arg1: i32) -> i32 {
    %c0_i32 = arith.constant 0 : i32
    %c0_i32_0 = arith.constant 0 : i32
    return %c0_i32 : i32
  }
  func.func @transform_1(%arg0: i32, %arg1: i32) -> i32 {
    %c0_i32 = arith.constant 0 : i32
    %c0_i32_0 = arith.constant 0 : i32
    return %c0_i32 : i32
  }
  func.func @transform_2(%arg0: i32, %arg1: i32) -> (i32, i32) {
    %c0_i32 = arith.constant 0 : i32
    %c0_i32_0 = arith.constant 0 : i32
    %c0_i32_1 = arith.constant 0 : i32
    return %c0_i32, %c0_i32_0 : i32, i32
  }
  func.func @transform_3(%arg0: i32, %arg1: i32) -> (i32, i32, i32) {
    %c0_i32 = arith.constant 0 : i32
    %c0_i32_0 = arith.constant 0 : i32
    %c0_i32_1 = arith.constant 0 : i32
    return %arg0, %c0_i32, %c0_i32_0 : i32, i32, i32
  }
  func.func @transform_4(%arg0: i32, %arg1: i32) -> (i32, i32, i32) {
    %c0_i32 = arith.constant 0 : i32
    %c0_i32_0 = arith.constant 0 : i32
    return %arg0, %c0_i32, %arg1 : i32, i32, i32
  }
  func.func @transform_5(%arg0: i32, %arg1: i32) -> (i32, i32, i32) {
    %c1_i32 = arith.constant 1 : i32
    %0 = arith.addi %arg1, %c1_i32 : i32
    %c1_i32_0 = arith.constant 1 : i32
    %1 = arith.muli %0, %c1_i32_0 : i32
    %c0_i32 = arith.constant 0 : i32
    %c0_i32_1 = arith.constant 0 : i32
    return %arg0, %c0_i32, %1 : i32, i32, i32
  }
  func.func @transform_6(%arg0: i32, %arg1: i32) -> (i32, i32, i32) {
    %c0_i32 = arith.constant 0 : i32
    %c0_i32_0 = arith.constant 0 : i32
    return %arg0, %c0_i32, %arg1 : i32, i32, i32
  }
}

</mosaic_0001>

<bundles_post_ra>
// kernel: edm_precond_sr_forward.1
= control target key start
LH: loop header
LB: loop body
LE: loop exit
PB: predicated region body
PF: predicated region fallthrough
CT: control target
= control target key end

     0   :  { %11 = vsyncpa [#allocation3], 0  ;;  %s1174_s0 = inlined_call_operand.vmem [shape: f32[2], index: 0, kind: input, shape index: {}]   ;;  %s1175_s1 = inlined_call_operand.vmem [shape: f32[2], index: 1, kind: input, shape index: {}]   ;;  %s1176_s2 = inlined_call_operand.vmem [shape: f32[4,72], index: 2, kind: input, shape index: {}]   ;;  %s1177_s3 = inlined_call_operand.vmem [shape: f32[2,4,1], index: 3, kind: input, shape index: {}]   ;;  %s1178_s4 = inlined_call_operand.vmem [shape: f32[2,8,384], index: 4, kind: input, shape index: {}, may-alias: {4,5}]   ;;  %s1179_s5 = inlined_call_operand.vmem [shape: f32[2,8,384], index: 5, kind: input, shape index: {}, may-alias: {4,5}]   ;;  %s1180_s6 = inlined_call_operand.vmem [shape: f32[2,4,256], index: 6, kind: output, shape index: {}]  }
   0x1   :  { %12 = vsyncpa [#allocation5], 0  ;;  %s1007_s21 = smov 0   ;;  %s1009_s22 = smov 0  }
   0x2   :  { %s1011_s23 = smov 0   ;;  %s1013_s24 = smov 0  }
   0x3   :  { %s1015_s25 = smov 0  }
   0x4 LB: > { %s695_s26 = sadd.s32 4294967295, %s954_s25   ;;  %s27_s27 = sadd.s32 1, %s946_s23  ;;  %s954_s25 = sphi %s1015_s25, %s18_s25   ;;  %s950_s24 = sphi %s1013_s24, %s1198_s24   ;;  %s946_s23 = sphi %s1011_s23, %s1197_s23   ;;  %s942_s22 = sphi %s1009_s22, %s1196_s22   ;;  %s938_s21 = sphi %s1007_s21, %s1195_s21  }
   0x5   : > { %p28_p0 = scmp.ge.s32.totalorder %s27_s27, 2  ;;  %s30_s28 = sadd.s32 1, %s950_s24 }
   0x6   : > { %p697_p1 = scmp.ge.s32.totalorder %s954_s25, 1  ;;  %p210_p2 = scmp.lt.s32.totalorder %s954_s25, 5 }
   0x7   : > { %s1200_s27 = smov (%p28_p0, %s27_s27), 0  ;;  %s1202_s28 = smov (!%p28_p0, %s30_s28), %s950_s24 }
   0x8   : > { %p1040_p3 = pnand %p697_p1, %p210_p2  ;;  %p32_p4 = scmp.ge.s32.totalorder %s1202_s28, 2 }
   0x9   : > { %p1044_p5 = scmp.eq.s32.totalorder %s695_s26, 0  ;;  %s223_s9 = sshll.u32 %s1174_s0, 4  ;;  %s224_s9 = int_to_ptr.vmem [resolvable:$true] %s223_s9 }
   0xa   : > { %s1184_s29 = scalar_select %p1040_p3, 1, 0 }
   0xb   : > { %s1185_s30 = scalar_select %p1044_p5, 1, 0 }
   0xc   : > { %p774_p6 = pneg %p1040_p3  ;;  %s1204_s28 = smov (%p32_p4, %s1202_s28), 0 }
   0xd   : > { %s234_s13 = sshll.u32 %s1175_s1, 4  ;;  %s878_s14 = scalar_lea.vmem %s224_s9, 16  ;;  %s235_s13 = int_to_ptr.vmem [resolvable:$true] %s234_s13 }
   0xe   : > { %p1057_p7 = pnand %p1044_p5, %p774_p6  ;;  %p879_p8 = scmp.ne.s32.totalorder %s224_s9, %s878_s14 }
   0xf   : > { %p886_p12 = scmp.lt.s32.totalorder %s224_s9, %s224_s9  ;;  %p887_p13 = scmp.lt.s32.totalorder %s878_s14, %s878_s14 }
  0x10   : > { %p880_p9 = pneg %p1057_p7 }
  0x11   : > { %p888_p0 = por %p887_p13, %p886_p12 }
  0x12   : > { %p881_p10 = pnand %p880_p9, %p879_p8 }
  0x14   : > { %p882_p11 = pneg %p881_p10 }
  0x16   : > { %p889_p1 = pnand %p888_p0, %p882_p11 }
  0x18   : > { %892 = shalt.err (!%p889_p1)
}
  0x19   : > { %s956_s15 = smov [#allocation2]   ;;  %s893_s16 = scalar_lea.vmem %s235_s13, 16 }
  0x1a   : > { %777 = dma.vmem_to_smem (!%p1057_p7), %s224_s9, 16, %s956_s15, [#allocation3]  }
  0x1b   : > { %p894_p2 = scmp.ne.s32.totalorder %s235_s13, %s893_s16  ;;  %p901_p5 = scmp.lt.s32.totalorder %s235_s13, %s235_s13 }
  0x1c   : > { %p902_p3 = scmp.lt.s32.totalorder %s893_s16, %s893_s16 }
  0x1d   : > { %p896_p4 = pnand %p894_p2, %p880_p9 }
  0x1e   : > { %p903_p8 = por %p902_p3, %p901_p5 }
  0x1f   : > { %p897_p6 = pneg %p896_p4 }
  0x21   : > { %p904_p10 = pnand %p903_p8, %p897_p6 }
  0x23   : > { %907 = shalt.err (!%p904_p10)
}
  0x24   : > { %s957_s17 = smov [#allocation4]   ;;  %p1187_p11 = scmp.ne.s32.totalorder %s1184_s29, 0 }
  0x25   : > { %780 = dma.vmem_to_smem (!%p1057_p7), %s235_s13, 16, %s957_s17, [#allocation5]  }
  0x26   : > { %281 = sbr.rel (%p1187_p11) target bundleno = 650 (0x28a), region = 44  ;;  %p1188_p12 = scmp.ne.s32.totalorder (!%p1187_p11), %s1185_s30, 0 }
  0x2d   : > { %929 = dma.done.wait (%p1188_p12), [#allocation3], 16  }
  0x2e   : > { %931 = vsyncadd (%p1188_p12), [#allocation3], 4294967280 }
  0x2f   : > { %933 = dma.done.wait (%p1188_p12), [#allocation5], 16  }
  0x30   : > { %935 = vsyncadd (%p1188_p12), [#allocation5], 4294967280 }
  0x31   : > { %291 = sfence }
  0x32   : > { %p335_p3 = scmp.lt.s32.totalorder %s942_s22, 1  ;;  %p341_p5 = scmp.lt.s32.totalorder %s938_s21, 2  ;;  %v958_v0 = vmov 0.0|0.0   ;;  %vm965_vm0 = vmmov 0   ;;  %v966_v4 = vmov 0.0   ;;  %v967_v5 = vmov 0  }
  0x33   : > { %s347_s18 = sadd.s32 1, %s938_s21  ;;  %749 = vmatprep.subr.bf16.mxu0 %v958_v0  ;;  %s959_s15 = smov 127   ;;  %746 = vmatprep.mubr.msk.f32.mxu0 %vm965_vm0, %v966_v4  ;;  %v367_v7 = vlaneseq  ;;  %vm402_vm1 = vcmask 916480   ;;  %vm434_vm3 = vcmask 1039360   ;;  %vm394_vm4 = vcmask 1031168  }
  0x34   : > { %s1084_s19 = scalar_select %p335_p3, %s942_s22, 1  ;;  %876 = vset.pattern.permute.xlu1 %v967_v5  ;;  %877 = vset.pattern.permute.xlu0 %v967_v5  ;;  %vm970_vm5 = vmmov 1   ;;  %vm410_vm7 = vcmask 900096   ;;  %vm441_vm10 = vcmask 908288   ;;  %vm418_vm11 = vcmask 785408  }
  0x35   : > { %s342_s20 = scalar_select %p341_p5, %s938_s21, 2  ;;  %v368_v8 = vand.u32 127, %v367_v7  ;;  %vm448_vm13 = vcmask 777216   ;;  %vm426_vm14 = vcmask 769024   ;;  %v451_v48 = vld [vmem:[%s1176_s2] sm:$0xf] }
  0x36   : > { %s765_s26 = smul.u32 3, %s1084_s19  ;;  %p350_p7 = scmp.lt.s32.totalorder %s347_s18, 2  ;;  %vm452_vm15 = vcmask 588800  }
  0x37   : > { %s960_s16 = smov 112   ;;  %s961_s17 = smov 126   ;;  %v373_v9 = vand.u32 15, %v368_v8 }
  0x38   : > { %s344_s29 = sadd.s32 %s765_s26, %s342_s20  ;;  %s1206_s18 = smov (!%p350_p7, %s347_s18), 2 }
  0x39   : > { %s705_s7 = sshll.u32 %s344_s29, 3  ;;  %s353_s10 = sadd.s32 %s765_s26, %s1206_s18  ;;  %vm1109_vm2 = vcmp.ne.s32.totalorder %v373_v9, 0  ;;  %vm1121_vm8 = vcmp.ne.s32.totalorder %v373_v9, 15 }
  0x3a   : > { %s346_s9 = scalar_lea.vmem %s1178_s4, %s705_s7  ;;  %s706_s11 = sshll.u32 %s353_s10, 3  ;;  %vm1116_vm6 = vmpackc.low %vm970_vm5, %vm1109_vm2 }
  0x3b   : > { %v1092_v1 = vld [vmem:[%s346_s9] sm:$0xff]  ;;  %s355_s14 = scalar_lea.vmem %s1179_s5, %s706_s11  ;;  %s962_s18 = smov 110   ;;  %vm755_vm9 = vmpackc.low %vm1109_vm2, %vm1121_vm8 }
  0x3c   : > { %v1097_v2 = vld [vmem:[%s355_s14] sm:$0xff]  ;;  %s963_s20 = smov 111   ;;  %s964_s26 = smov 96   ;;  %vm759_vm12 = vmpackc.low %vm1121_vm8, %vm970_vm5 }
  0x3d   : > { %v841_v3 = vpack.i.bf16 %v1097_v2, %v1092_v1  ;;  %s704_s29 = sshll.u32 %s1084_s19, 2  ;;  %s968_s9 = smov 95  }
  0x3e   : > { %s338_s30 = scalar_lea.vmem %s1177_s3, %s704_s29  ;;  %s969_s10 = smov 94  }
  0x3f   : > { %842 = vrot.lane.b32.xlu0 %v841_v3, %s959_s15  ;;  %852 = vrot.lane.b32.xlu1 %v841_v3, %s960_s16  ;;  %v539_v6 = vld [vmem:[%s338_s30] sm:$0xf]  ;;  %s530_s13 = sld [smem:[#allocation4 + %s942_s22]]  ;;  %s971_s14 = smov 17  }
  0x40   : > { %s526_s15 = sld [smem:[#allocation2 + %s942_s22]]  ;;  %p359_p9 = scmp.lt.s32.totalorder %s938_s21, 1 }
  0x41   : > { %s707_s16 = sshll.u32 %s1084_s19, 1 }
  0x42   : > { %s1208_s21 = smov (!%p359_p9, %s938_s21), 1 }
  0x43   : > { %847 = vrot.lane.b32.xlu0 %v841_v3, %s961_s17  ;;  %857 = vrot.lane.b32.xlu1 %v841_v3, %s962_s18  ;;  %s362_s17 = sadd.s32 %s707_s16, %s1208_s21 }
  0x44   : > { %s708_s22 = sshll.u32 %s362_s17, 2 }
  0x45   : > { %v531_v49 = vstv %s530_s13  ;;  %s364_s29 = scalar_lea.vmem %s1180_s6, %s708_s22 }
  0x46   : > { %v527_v53 = vstv %s526_s15 }
  0x47   : > { %862 = vrot.lane.b32.xlu0 %v841_v3, %s963_s20  ;;  %867 = vrot.lane.b32.xlu1 %v841_v3, %s964_s26  ;;  %v529_v54 = vmul.f32 %v527_v53, %v1097_v2  ;;  %v528_v55 = vmul.f32 %v527_v53, %v1092_v1 }
  0x4b   : > { %872 = vrot.lane.b32.xlu0 %v841_v3, %s968_s9  ;;  %422 = vrot.lane.b32.xlu1 %v1092_v1, %s969_s10 }
  0x4f   : > { %424 = vrot.lane.b32.xlu0 %v1097_v2, %s969_s10  ;;  %542 = vperm.xlu1 %876, %v539_v6  }
  0xb1   : > { %v843_v10 = vpop.permute.xlu0 %842  ;;  %v853_v11 = vpop.permute.xlu1 %852 }
  0xb2   : > { %v845_v13 = vunpack.i.h.bf16 %v843_v10  ;;  %v844_v14 = vunpack.i.l.bf16 %v843_v10  ;;  %v855_v15 = vunpack.i.h.bf16 %v853_v11  ;;  %v854_v16 = vunpack.i.l.bf16 %v853_v11 }
  0xb4   : > { %v435_v17 = vsel %vm434_vm3, %v844_v14, %v845_v13  ;;  %v403_v19 = vsel %vm402_vm1, %v854_v16, %v855_v15 }
  0xb5   : > { %v848_v20 = vpop.permute.xlu0 %847  ;;  %v750_v21 = vpack.c.bf16 %v435_v17, %v1092_v1  ;;  %v858_v22 = vpop.permute.xlu1 %857 }
  0xb6   : > { %v850_v24 = vunpack.i.h.bf16 %v848_v20  ;;  %v849_v25 = vunpack.i.l.bf16 %v848_v20  ;;  %v860_v26 = vunpack.i.h.bf16 %v858_v22  ;;  %v859_v27 = vunpack.i.l.bf16 %v858_v22 }
  0xb7   : > { %752 = vmatpush3.bf16.msk.msra.mxu0 %vm1116_vm6, %v750_v21 }
  0xb8   : > { %v395_v28 = vsel %vm394_vm4, %v849_v25, %v850_v24  ;;  %753 = vmatprep.subr.bf16.mxu0 %v958_v0  ;;  %v411_v30 = vsel %vm410_vm7, %v859_v27, %v860_v26 }
  0xb9   : > { %v754_v29 = vpack.c.bf16 %v403_v19, %v395_v28  ;;  %v863_v31 = vpop.permute.xlu0 %862  ;;  %v868_v32 = vpop.permute.xlu1 %867 }
  0xba   : > { %v865_v33 = vunpack.i.h.bf16 %v863_v31  ;;  %v864_v34 = vunpack.i.l.bf16 %v863_v31  ;;  %v870_v35 = vunpack.i.h.bf16 %v868_v32  ;;  %v869_v36 = vunpack.i.l.bf16 %v868_v32 }
  0xbb   : > { %756 = vmatpush3.bf16.msk.msra.mxu0 %vm755_vm9, %v754_v29 }
  0xbc   : > { %v442_v37 = vsel %vm441_vm10, %v864_v34, %v865_v33  ;;  %757 = vmatprep.subr.bf16.mxu0 %v958_v0  ;;  %v419_v40 = vsel %vm418_vm11, %v869_v36, %v870_v35 }
  0xbd   : > { %v758_v38 = vpack.c.bf16 %v411_v30, %v442_v37  ;;  %v873_v39 = vpop.permute.xlu0 %872  ;;  %v423_v45 = vpop.permute.xlu1 %422 }
  0xbe   : > { %v875_v41 = vunpack.i.h.bf16 %v873_v39  ;;  %v874_v42 = vunpack.i.l.bf16 %v873_v39 }
  0xbf   : > { %760 = vmatpush3.bf16.msk.msra.mxu0 %vm759_vm12, %v758_v38 }
  0xc0   : > { %v449_v43 = vsel %vm448_vm13, %v874_v42, %v875_v41  ;;  %761 = vmatprep.subr.bf16.mxu0 %v958_v0 }
  0xc1   : > { %v762_v44 = vpack.c.bf16 %v449_v43, %v419_v40  ;;  %v425_v46 = vpop.permute.xlu0 %424 }
  0xc2   : > { %v427_v47 = vsel %vm426_vm14, %v423_v45, %v425_v46 }
  0xc3   : > { %764 = vmatpush3.bf16.msk.msra.mxu0 %vm1116_vm6, %v762_v44 }
  0xc4   : > { %744 = vmatprep.subr.mxu0 %v966_v4 }
  0xc7   : > { %745 = vmatpush3.msk.msra.mxu0 %vm1121_vm8, %v427_v47 }
  0xc8   : > { %747 = vmatmul.mubr.msk.f32.vlgmr.msra.gmra.mrb[0].mxu0 %vm452_vm15, %v451_v48 }
  0xce   : > { %v543_v57 = vpop.permute.xlu1 %542 }
 0x19b   : > { %v522_v50 = vpop.f32.mrb[0].mxu0 }
 0x19c   : > { %v532_v51 = vmul.f32 %v531_v49, %v522_v50  ;;  %v748_v52 = vpop.f32.mrb[1].mxu0 }
 0x19e   : > { %534 = vrot.lane.b32.xlu0 %v532_v51, %s971_s14 }
 0x210   : > { %v535_v56 = vpop.permute.xlu0 %534 }
 0x211   : > { %v537_v58 = vadd.f32 %v535_v56, %v528_v55  ;;  %v538_v59 = vadd.f32 %v535_v56, %v529_v54 }
 0x213   : > { %v545_v60 = vadd.f32 %v543_v57, %v537_v58  ;;  %v546_v61 = vadd.f32 %v543_v57, %v538_v59 }
 0x215   : > { %551 = vrot.lane.b32.xlu0 %v546_v61, %s963_s20  ;;  %549 = vrot.lane.b32.xlu1 %v545_v60, %s963_s20 }
 0x287   : > { %v552_v62 = vpop.permute.xlu0 %551  ;;  %v550_v63 = vpop.permute.xlu1 %549 }
 0x288   : > { %v553_v0 = vsel %vm441_vm10, %v550_v63, %v552_v62 }
 0x289   : > { %555 = vst [vmem:[%s364_s29] sm:$0xf] %v553_v0 }
 0x28a PF: > { %s18_s25 = sadd.s32 1, %s954_s25   ;;  %s1195_s21 = smov %s946_s23 }
 0x28b   : > { %p15_p13 = scmp.ge.s32.totalorder %s18_s25, 6   ;;  %s1196_s22 = smov %s950_s24 }
 0x28c   : > { %s1197_s23 = smov %s1200_s27  ;;  %s1198_s24 = smov %s1204_s28 }
 0x28d   :  { %17 = sbr.rel (!%p15_p13) target bundleno = 4 (0x4), region = 89 }
 0x294   :  { %583 = vsyncpa [#allocation3], 1 }
 0x295   :  { %585 = vsyncpa [#allocation3 + $0x1], 1 }
 0x296   :  { %586 = vsyncpa [#allocation5], 1 }

</bundles_post_ra>
